<compile_context>
chip_gen: v5e
topology: v5e:2x2
jax: 0.10.0
libtpu: 0.0.40
codegen_flags: <defaults>
</compile_context>

<pallas_src>
import functools

import jax
import jax.numpy as jnp
from jax.experimental import pallas as pl
from jax.experimental.pallas import tpu as pltpu  # noqa: F401  (not needed at this size)


# ---------------------------------------------------------------------------
# Fused kernel: conv1 + bias + LeakyReLU + conv2 + bias + residual
# ---------------------------------------------------------------------------
def resnet_block_kernel(x_ref, shift_ref, wb1_ref, b1_ref, wb2_ref, b2_ref,
                        out_ref, *, ks, pad, slope):
    x = x_ref[...]                                   # (N*H, W*C), lane-dense f32

    # Row-shift matrices (dy taps + H zero padding). The dy == 0 tap is the
    # identity and is skipped (uses `x`/`h` directly).
    shift = [None if t == pad else shift_ref[t] for t in range(ks)]

    def band(a):
        # Band operand (N*H, ks*W*C): for output row y, the ks input rows
        # y-pad .. y+pad (zero rows outside the image) laid out along lanes.
        # Lane offsets are multiples of W*C = 128, so the concat is lane-aligned.
        parts = [a if t == pad
                 else jnp.dot(shift[t], a, preferred_element_type=jnp.float32)
                 for t in range(ks)]
        return jnp.concatenate(parts, axis=-1)

    # ---- conv1 + bias + LeakyReLU(0.2); h stays in registers.
    h = jnp.dot(band(x), wb1_ref[...],
                preferred_element_type=jnp.float32) + b1_ref[...]
    h = jnp.where(h > 0, h, slope * h)

    # ---- conv2 + bias + residual add (full-width, unmasked store).
    o = jnp.dot(band(h), wb2_ref[...],
                preferred_element_type=jnp.float32) + b2_ref[...]
    out_ref[...] = o + x


# ---------------------------------------------------------------------------
# Wrapper: layout glue + folding conv weights into banded matmul operands
# ---------------------------------------------------------------------------
def resnet_block(x_nchw, w1_hwio, b1, w2_hwio, b2, ks):
    n, c, hh, ww = x_nchw.shape
    cout = w1_hwio.shape[-1]
    assert cout == c, "residual add requires in_dim == out_dim"
    pad = ks // 2
    nh = n * hh

    # Lane-dense activation slab: NCHW -> NHWC -> (N*H, W*C); W*C = 128 here.
    x = jnp.transpose(x_nchw, (0, 2, 3, 1)).astype(jnp.float32).reshape(nh, ww * c)

    # Banded weights (ks*W*Cin, W*Cout): fold kx taps + W zero-padding into the
    # contraction so each conv is a single dense lane-aligned MXU matmul.
    def band_weight(w_hwio):
        ci, co = w_hwio.shape[2], w_hwio.shape[3]
        xi = jnp.arange(ww)[:, None]                    # input column index
        xo = jnp.arange(ww)[None, :]                    # output column index
        kx = xi - xo + pad
        valid = ((kx >= 0) & (kx < ks)).astype(jnp.float32)
        kxc = jnp.clip(kx, 0, ks - 1)
        wb = w_hwio.astype(jnp.float32)[:, kxc, :, :]   # (ks, W, W, ci, co)
        wb = wb * valid[None, :, :, None, None]
        wb = jnp.transpose(wb, (0, 1, 3, 2, 4))         # (ky, xi, ci, xo, co)
        return wb.reshape(ks * ww * ci, ww * co)

    wb1 = band_weight(w1_hwio)
    wb2 = band_weight(w2_hwio)
    b1r = jnp.tile(b1.astype(jnp.float32), ww).reshape(1, ww * cout)
    b2r = jnp.tile(b2.astype(jnp.float32), ww).reshape(1, ww * cout)

    # Row-shift matrices (ks, N*H, N*H): shift[t] @ x picks image row y + (t - pad)
    # for each output row y, with zero rows at the image top/bottom (H zero
    # padding) and across batch boundaries.
    r = jnp.arange(nh)
    y = r % hh
    shifts = []
    for t in range(ks):
        d = t - pad
        st = ((r[None, :] == r[:, None] + d)
              & (y[:, None] + d >= 0) & (y[:, None] + d <= hh - 1))
        shifts.append(st.astype(jnp.float32))
    shift = jnp.stack(shifts, axis=0)                   # (ks, N*H, N*H)

    out = pl.pallas_call(
        functools.partial(resnet_block_kernel, ks=ks, pad=pad, slope=0.2),
        out_shape=jax.ShapeDtypeStruct((nh, ww * cout), jnp.float32),
        # No grid: activations + folded weights (< 0.5 MiB) are VMEM-resident for a
        # single invocation; no scratch buffers needed.
    )(x, shift, wb1, b1r, wb2, b2r)

    return jnp.transpose(out.reshape(n, hh, ww, cout), (0, 3, 1, 2))  # NHWC -> NCHW


# ---------------------------------------------------------------------------
# Pure-JAX reference (for correctness check)
# ---------------------------------------------------------------------------
def resnet_block_ref(x_nchw, w1, b1, w2, b2, ks):
    pad = ks // 2
    dn = ("NHWC", "HWIO", "NHWC")
    x = jnp.transpose(x_nchw, (0, 2, 3, 1)).astype(jnp.float32)
    h = jax.lax.conv_general_dilated(
        x, w1, (1, 1), [(pad, pad), (pad, pad)], dimension_numbers=dn) + b1
    h = jnp.where(h > 0, h, 0.2 * h)
    o = jax.lax.conv_general_dilated(
        h, w2, (1, 1), [(pad, pad), (pad, pad)], dimension_numbers=dn) + b2
    o = o + x
    return jnp.transpose(o, (0, 3, 1, 2))


# ---------------------------------------------------------------------------
# Main
# ---------------------------------------------------------------------------
if __name__ == "__main__":
    # ResnetBlock(in_dim=8, out_dim=8, ks=3); W*C = 128 -> lane-dense slabs.
    N, C, H, W, KS = 2, 8, 16, 16, 3

    key = jax.random.PRNGKey(0)
    kx, kw1, kb1, kw2, kb2 = jax.random.split(key, 5)

    x = jax.random.normal(kx, (N, C, H, W), jnp.float32)
    # Deterministic synthetic parameters (HWIO layout), small scale like a conv init.
    w1 = jax.random.normal(kw1, (KS, KS, C, C), jnp.float32) * 0.1
    b1 = jax.random.normal(kb1, (C,), jnp.float32) * 0.1
    w2 = jax.random.normal(kw2, (KS, KS, C, C), jnp.float32) * 0.1
    b2 = jax.random.normal(kb2, (C,), jnp.float32) * 0.1

    out = jax.jit(resnet_block, static_argnums=(5,))(x, w1, b1, w2, b2, KS)
    out = jax.block_until_ready(out)

    ref = jax.block_until_ready(resnet_block_ref(x, w1, b1, w2, b2, KS))
    assert out.shape == (N, C, H, W)
    assert jnp.allclose(out, ref, atol=1e-4, rtol=1e-4), (
        f"max abs err = {jnp.max(jnp.abs(out - ref))}")

    print("KERNEL_OK")
</pallas_src>

<mosaic_0001>
module attributes {stable_mosaic.version = 11 : i64} {
  func.func @resnet_block_kernel(%arg0: memref<32x128xf32, #tpu.memory_space<vmem>>, %arg1: memref<3x32x32xf32, #tpu.memory_space<vmem>>, %arg2: memref<384x128xf32, #tpu.memory_space<vmem>>, %arg3: memref<1x128xf32, #tpu.memory_space<vmem>>, %arg4: memref<384x128xf32, #tpu.memory_space<vmem>>, %arg5: memref<1x128xf32, #tpu.memory_space<vmem>>, %arg6: memref<32x128xf32, #tpu.memory_space<vmem>>) attributes {dimension_semantics = [], scalar_prefetch = 0 : i64, scratch_operands = 0 : i64, tpu.core_type = #tpu.core_type<tc>} {
    %c0 = arith.constant 0 : index
    %c0_0 = arith.constant 0 : index
    %0 = vector.load %arg0[%c0, %c0_0] : memref<32x128xf32, #tpu.memory_space<vmem>>, vector<32x128xf32>
    %c0_1 = arith.constant 0 : index
    %c0_2 = arith.constant 0 : index
    %c0_3 = arith.constant 0 : index
    %1 = vector.load %arg1[%c0_1, %c0_2, %c0_3] : memref<3x32x32xf32, #tpu.memory_space<vmem>>, vector<1x32x32xf32>
    %2 = vector.shape_cast %1 : vector<1x32x32xf32> to vector<32x32xf32>
    %c2 = arith.constant 2 : index
    %c0_4 = arith.constant 0 : index
    %c0_5 = arith.constant 0 : index
    %3 = vector.load %arg1[%c2, %c0_4, %c0_5] : memref<3x32x32xf32, #tpu.memory_space<vmem>>, vector<1x32x32xf32>
    %4 = vector.shape_cast %3 : vector<1x32x32xf32> to vector<32x32xf32>
    %cst = arith.constant dense<0.000000e+00> : vector<32x128xf32>
    %5 = tpu.matmul %2, %0, %cst {dimension_numbers = #tpu.dot_dimension_numbers<[1], [0], [0], [1], [0, 0, 1, 1], [], []>} : vector<32x32xf32>, vector<32x128xf32>, vector<32x128xf32> -> vector<32x128xf32>
    %cst_6 = arith.constant dense<0.000000e+00> : vector<32x128xf32>
    %6 = tpu.matmul %4, %0, %cst_6 {dimension_numbers = #tpu.dot_dimension_numbers<[1], [0], [0], [1], [0, 0, 1, 1], [], []>} : vector<32x32xf32>, vector<32x128xf32>, vector<32x128xf32> -> vector<32x128xf32>
    %7 = tpu.concatenate %5, %0, %6 in 1 : vector<32x128xf32>, vector<32x128xf32>, vector<32x128xf32> -> vector<32x384xf32>
    %c0_7 = arith.constant 0 : index
    %c0_8 = arith.constant 0 : index
    %8 = vector.load %arg2[%c0_7, %c0_8] : memref<384x128xf32, #tpu.memory_space<vmem>>, vector<384x128xf32>
    %cst_9 = arith.constant dense<0.000000e+00> : vector<32x128xf32>
    %9 = tpu.matmul %7, %8, %cst_9 {dimension_numbers = #tpu.dot_dimension_numbers<[1], [0], [0], [1], [0, 0, 1, 1], [], []>} : vector<32x384xf32>, vector<384x128xf32>, vector<32x128xf32> -> vector<32x128xf32>
    %c0_10 = arith.constant 0 : index
    %c0_11 = arith.constant 0 : index
    %10 = vector.load %arg3[%c0_10, %c0_11] : memref<1x128xf32, #tpu.memory_space<vmem>>, vector<1x128xf32>
    %11 = vector.broadcast %10 : vector<1x128xf32> to vector<32x128xf32>
    %12 = arith.addf %9, %11 : vector<32x128xf32>
    %cst_12 = arith.constant 0.000000e+00 : f32
    %13 = vector.broadcast %cst_12 : f32 to vector<32x128xf32>
    %14 = arith.cmpf ogt, %12, %13 : vector<32x128xf32>
    %cst_13 = arith.constant 2.000000e-01 : f32
    %15 = vector.broadcast %cst_13 : f32 to vector<32x128xf32>
    %16 = arith.mulf %15, %12 : vector<32x128xf32>
    %17 = arith.select %14, %12, %16 : vector<32x128xi1>, vector<32x128xf32>
    %cst_14 = arith.constant dense<0.000000e+00> : vector<32x128xf32>
    %18 = tpu.matmul %2, %17, %cst_14 {dimension_numbers = #tpu.dot_dimension_numbers<[1], [0], [0], [1], [0, 0, 1, 1], [], []>} : vector<32x32xf32>, vector<32x128xf32>, vector<32x128xf32> -> vector<32x128xf32>
    %cst_15 = arith.constant dense<0.000000e+00> : vector<32x128xf32>
    %19 = tpu.matmul %4, %17, %cst_15 {dimension_numbers = #tpu.dot_dimension_numbers<[1], [0], [0], [1], [0, 0, 1, 1], [], []>} : vector<32x32xf32>, vector<32x128xf32>, vector<32x128xf32> -> vector<32x128xf32>
    %20 = tpu.concatenate %18, %17, %19 in 1 : vector<32x128xf32>, vector<32x128xf32>, vector<32x128xf32> -> vector<32x384xf32>
    %c0_16 = arith.constant 0 : index
    %c0_17 = arith.constant 0 : index
    %21 = vector.load %arg4[%c0_16, %c0_17] : memref<384x128xf32, #tpu.memory_space<vmem>>, vector<384x128xf32>
    %cst_18 = arith.constant dense<0.000000e+00> : vector<32x128xf32>
    %22 = tpu.matmul %20, %21, %cst_18 {dimension_numbers = #tpu.dot_dimension_numbers<[1], [0], [0], [1], [0, 0, 1, 1], [], []>} : vector<32x384xf32>, vector<384x128xf32>, vector<32x128xf32> -> vector<32x128xf32>
    %c0_19 = arith.constant 0 : index
    %c0_20 = arith.constant 0 : index
    %23 = vector.load %arg5[%c0_19, %c0_20] : memref<1x128xf32, #tpu.memory_space<vmem>>, vector<1x128xf32>
    %24 = vector.broadcast %23 : vector<1x128xf32> to vector<32x128xf32>
    %25 = arith.addf %22, %24 : vector<32x128xf32>
    %26 = arith.addf %25, %0 : vector<32x128xf32>
    %c0_21 = arith.constant 0 : index
    %c0_22 = arith.constant 0 : index
    %27 = vector.load %arg6[%c0_21, %c0_22] : memref<32x128xf32, #tpu.memory_space<vmem>>, vector<32x128xf32>
    tpu.vector_store %arg6[%c0_21, %c0_22], %26 {strides = array<i32>} : memref<32x128xf32, #tpu.memory_space<vmem>>, vector<32x128xf32>,
    return
  }
}

</mosaic_0001>

<bundles_post_ra>
// kernel: tile.13
= control target key start
LH: loop header
LB: loop body
LE: loop exit
PB: predicated region body
PF: predicated region fallthrough
CT: control target
= control target key end

     0   :  { %s28_s0 = inlined_call_operand.vmem [shape: f32[8], index: 0, kind: input, shape index: {}]   ;;  %s29_s1 = inlined_call_operand.vmem [shape: f32[16,8], index: 1, kind: output, shape index: {}]  }
   0x1   :  { %v4_v0 = vld [vmem:[%s28_s0] ss:$0 sm:$0xff] }
   0x2   :  { %5 = vst [vmem:[%s29_s1] sm:$0xff] %v4_v0 }
   0x3   :  { %8 = vst [vmem:[%s29_s1 + $0x8] sm:$0xff] %v4_v0 }

// kernel: tile.14
= control target key start
LH: loop header
LB: loop body
LE: loop exit
PB: predicated region body
PF: predicated region fallthrough
CT: control target
= control target key end

     0   :  { %s131_s10 = smov 120   ;;  %s132_s11 = smov 104   ;;  %vm3_vm0 = vcmask 64512   ;;  %vm9_vm1 = vcmask 1048512   ;;  %vm15_vm2 = vcmask 982912   ;;  %vm21_vm3 = vcmask 917312   ;;  %s207_s0 = inlined_call_operand.vmem [shape: f32[16,8], index: 0, kind: input, shape index: {}]   ;;  %s208_s1 = inlined_call_operand.vmem [shape: f32[1,128], index: 1, kind: output, shape index: {}]  }
   0x1   :  { %v101_v0 = vld [vmem:[%s207_s0 + $0xf] sm:$0x1]   ;;  %v103_v1 = vld [vmem:[%s207_s0 + $0xd] sm:$0x1]   ;;  %v105_v2 = vld [vmem:[%s207_s0 + $0xb] sm:$0x1]  }
   0x2   :  { %7 = vrot.lane.b32.xlu0 %v101_v0, %s131_s10  ;;  %19 = vrot.lane.b32.xlu1 %v103_v1, %s132_s11  ;;  %s133_s14 = smov 88   ;;  %v102_v3 = vld [vmem:[%s207_s0 + $0xe] sm:$0x1]   ;;  %v104_v4 = vld [vmem:[%s207_s0 + $0xc] sm:$0x1]   ;;  %s134_s19 = smov 112  }
   0x3   :  { %31 = vrot.lane.b32.xlu2 %v105_v2, %s133_s14  ;;  %s135_s20 = smov 96   ;;  %v106_v5 = vld [vmem:[%s207_s0 + $0xa] sm:$0x1]   ;;  %s136_s23 = smov 80   ;;  %v107_v6 = vld [vmem:[%s207_s0 + $0x9] sm:$0x1]  }
   0x4   :  { %v108_v7 = vld [vmem:[%s207_s0 + $0x8] sm:$0x1]   ;;  %s137_s28 = smov 72   ;;  %s138_s29 = smov 64   ;;  %v109_v8 = vld [vmem:[%s207_s0 + $0x7] sm:$0x1]  }
   0x5   :  { %s139_s3 = smov 56   ;;  %v110_v9 = vld [vmem:[%s207_s0 + $0x6] sm:$0x1]   ;;  %v111_v10 = vld [vmem:[%s207_s0 + $0x5] sm:$0x1]   ;;  %s140_s8 = smov 48  }
   0x6   :  { %s141_s9 = smov 40   ;;  %v112_v11 = vld [vmem:[%s207_s0 + $0x4] sm:$0x1]   ;;  %s142_s12 = smov 32   ;;  %v113_v12 = vld [vmem:[%s207_s0 + $0x3] sm:$0x1]  }
   0x7   :  { %v114_v13 = vld [vmem:[%s207_s0 + $0x2] sm:$0x1]   ;;  %s143_s17 = smov 24   ;;  %s144_s18 = smov 16   ;;  %v115_v14 = vld [vmem:[%s207_s0 + $0x1] sm:$0x1]  }
   0x8   :  { %s145_s21 = smov 8   ;;  %v2_v15 = vld [vmem:[%s207_s0] sm:$0x1]   ;;  %vm27_vm4 = vcmask 851712   ;;  %vm33_vm5 = vcmask 786112   ;;  %vm39_vm6 = vcmask 720512  }
   0x9   :  { %4 = vst.msk [vmem:[#allocation0] sm:$0x1] %vm3_vm0, %v2_v15   ;;  %vm45_vm7 = vcmask 654912   ;;  %vm51_vm8 = vcmask 589312   ;;  %vm57_vm9 = vcmask 523712   ;;  %vm63_vm10 = vcmask 458112  }
   0xa   :  { %13 = vrot.lane.b32.xlu0 %v102_v3, %s134_s19  ;;  %25 = vrot.lane.b32.xlu1 %v104_v4, %s135_s20  ;;  %vm69_vm11 = vcmask 392512   ;;  %vm75_vm12 = vcmask 326912   ;;  %vm81_vm13 = vcmask 261312   ;;  %vm87_vm14 = vcmask 195712  }
   0xb   :  { %37 = vrot.lane.b32.xlu2 %v106_v5, %s136_s23  ;;  %vm93_vm15 = vcmask 130112  }
  0x12   :  { %43 = vrot.lane.b32.xlu0 %v107_v6, %s137_s28  ;;  %49 = vrot.lane.b32.xlu1 %v108_v7, %s138_s29 }
  0x13   :  { %55 = vrot.lane.b32.xlu2 %v109_v8, %s139_s3 }
  0x1a   :  { %61 = vrot.lane.b32.xlu0 %v110_v9, %s140_s8  ;;  %67 = vrot.lane.b32.xlu1 %v111_v10, %s141_s9 }
  0x1b   :  { %73 = vrot.lane.b32.xlu2 %v112_v11, %s142_s12 }
  0x22   :  { %79 = vrot.lane.b32.xlu0 %v113_v12, %s143_s17  ;;  %85 = vrot.lane.b32.xlu1 %v114_v13, %s144_s18 }
  0x23   :  { %91 = vrot.lane.b32.xlu2 %v115_v14, %s145_s21 }
  0x5d   :  { %v32_v16 = vpop.permute.xlu2 %31  }
  0x65   :  { %v38_v17 = vpop.permute.xlu2 %37  }
  0x6d   :  { %v56_v18 = vpop.permute.xlu2 %55  }
  0x74   :  { %v8_v19 = vpop.permute.xlu0 %7   ;;  %v20_v20 = vpop.permute.xlu1 %19  }
  0x75   :  { %10 = vst.msk [vmem:[#allocation0] sm:$0x1] %vm9_vm1, %v8_v19   ;;  %v74_v21 = vpop.permute.xlu2 %73  }
  0x7c   :  { %v14_v22 = vpop.permute.xlu0 %13   ;;  %v26_v23 = vpop.permute.xlu1 %25  }
  0x7d   :  { %16 = vst.msk [vmem:[#allocation0] sm:$0x1] %vm15_vm2, %v14_v22   ;;  %v92_v24 = vpop.permute.xlu2 %91  }
  0x7e   :  { %22 = vst.msk [vmem:[#allocation0] sm:$0x1] %vm21_vm3, %v20_v20  }
  0x7f   :  { %28 = vst.msk [vmem:[#allocation0] sm:$0x1] %vm27_vm4, %v26_v23  }
  0x80   :  { %34 = vst.msk [vmem:[#allocation0] sm:$0x1] %vm33_vm5, %v32_v16  }
  0x81   :  { %40 = vst.msk [vmem:[#allocation0] sm:$0x1] %vm39_vm6, %v38_v17  }
  0x84   :  { %v44_v25 = vpop.permute.xlu0 %43   ;;  %v50_v26 = vpop.permute.xlu1 %49  }
  0x85   :  { %46 = vst.msk [vmem:[#allocation0] sm:$0x1] %vm45_vm7, %v44_v25  }
  0x86   :  { %52 = vst.msk [vmem:[#allocation0] sm:$0x1] %vm51_vm8, %v50_v26  }
  0x87   :  { %58 = vst.msk [vmem:[#allocation0] sm:$0x1] %vm57_vm9, %v56_v18  }
  0x8c   :  { %v62_v27 = vpop.permute.xlu0 %61   ;;  %v68_v28 = vpop.permute.xlu1 %67  }
  0x8d   :  { %64 = vst.msk [vmem:[#allocation0] sm:$0x1] %vm63_vm10, %v62_v27  }
  0x8e   :  { %70 = vst.msk [vmem:[#allocation0] sm:$0x1] %vm69_vm11, %v68_v28  }
  0x8f   :  { %76 = vst.msk [vmem:[#allocation0] sm:$0x1] %vm75_vm12, %v74_v21  }
  0x94   :  { %v80_v29 = vpop.permute.xlu0 %79   ;;  %v86_v30 = vpop.permute.xlu1 %85  }
  0x95   :  { %82 = vst.msk [vmem:[#allocation0] sm:$0x1] %vm81_vm13, %v80_v29  }
  0x96   :  { %88 = vst.msk [vmem:[#allocation0] sm:$0x1] %vm87_vm14, %v86_v30  }
  0x97   :  { %94 = vst.msk [vmem:[#allocation0] sm:$0x1] %vm93_vm15, %v92_v24  }
  0x9e   :  { %v97_v31 = vld [vmem:[#allocation0] sm:$0x1] }
  0x9f   :  { %100 = vst [vmem:[%s208_s1] sm:$0x1] %v97_v31 }

// kernel: resnet_block.1
= control target key start
LH: loop header
LB: loop body
LE: loop exit
PB: predicated region body
PF: predicated region fallthrough
CT: control target
= control target key end

     0   :  { %vm36_vm0 = vcmask 261120   ;;  %s950_s0 = inlined_call_operand.vmem [shape: f32[32,128], index: 0, kind: input, shape index: {}]   ;;  %s951_s2 = inlined_call_operand.vmem [shape: f32[384,128], index: 2, kind: input, shape index: {}]   ;;  %s952_s1 = inlined_call_operand.vmem [shape: f32[3,32,32], index: 1, kind: input, shape index: {}]   ;;  %s953_s3 = inlined_call_operand.vmem [shape: f32[1,128], index: 3, kind: input, shape index: {}]   ;;  %s954_s4 = inlined_call_operand.vmem [shape: f32[384,128], index: 4, kind: input, shape index: {}]   ;;  %s955_s5 = inlined_call_operand.vmem [shape: f32[1,128], index: 5, kind: input, shape index: {}]   ;;  %s956_s6 = inlined_call_operand.vmem [shape: f32[32,128], index: 6, kind: output, shape index: {}]  }
   0x1   :  { %v539_v0 = vld [vmem:[%s950_s0 + $0x18] sm:$0xff]  ;;  %v544_v1 = vld [vmem:[%s950_s0 + $0x10] sm:$0xff]  ;;  %v551_v2 = vld [vmem:[%s950_s0 + $0x8] sm:$0xff] }
   0x2   :  { %61 = vmatpush.msra.mxu0 %v539_v0  ;;  %102 = vmatpush.msra.mxu1 %v539_v0  ;;  %v558_v3 = vld [vmem:[%s950_s0] sm:$0xff]  ;;  %v134_v4 = vld [vmem:[%s951_s2 + $0x78] sm:$0xff]  ;;  %v133_v8 = vld [vmem:[%s951_s2 + $0x70] sm:$0xff] }
   0x3   :  { %v150_v5 = vld [vmem:[%s951_s2 + $0xf8] sm:$0xff]  ;;  %v570_v6 = vld [vmem:[%s952_s1] sm:$0xff]  ;;  %171 = vmatpush.msra.mxu2 %v134_v4  ;;  %v149_v9 = vld [vmem:[%s951_s2 + $0xf0] sm:$0xff] }
   0x4   :  { %62 = vmatpush.msra.mxu0 %v544_v1  ;;  %103 = vmatpush.msra.mxu1 %v544_v1  ;;  %v576_v7 = vld [vmem:[%s952_s1 + $0x40] sm:$0xff]  ;;  %v166_v10 = vld [vmem:[%s951_s2 + $0x178] sm:$0xff]  ;;  %v132_v11 = vld [vmem:[%s951_s2 + $0x68] sm:$0xff] }
   0x5   :  { %200 = vmatpush.msra.mxu3 %v150_v5  ;;  %v148_v12 = vld [vmem:[%s951_s2 + $0xe8] sm:$0xff]  ;;  %172 = vmatpush.msra.mxu2 %v133_v8  ;;  %v165_v13 = vld [vmem:[%s951_s2 + $0x170] sm:$0xff]  ;;  %v131_v14 = vld [vmem:[%s951_s2 + $0x60] sm:$0xff] }
   0x6   :  { %63 = vmatpush.msra.mxu0 %v551_v2  ;;  %104 = vmatpush.msra.mxu1 %v551_v2  ;;  %v147_v15 = vld [vmem:[%s951_s2 + $0xe0] sm:$0xff]  ;;  %v164_v16 = vld [vmem:[%s951_s2 + $0x168] sm:$0xff]  ;;  %v130_v17 = vld [vmem:[%s951_s2 + $0x58] sm:$0xff] }
   0x7   :  { %201 = vmatpush.msra.mxu3 %v149_v9  ;;  %173 = vmatpush.msra.mxu2 %v132_v11  ;;  %v146_v18 = vld [vmem:[%s951_s2 + $0xd8] sm:$0xff]  ;;  %v620_v19 = vld [vmem:[%s952_s1 + $0x8] sm:$0xff]  ;;  %v129_v21 = vld [vmem:[%s951_s2 + $0x50] sm:$0xff] }
   0x8   :  { %64 = vmatpush.msra.mxu0 %v558_v3  ;;  %105 = vmatpush.msra.mxu1 %v558_v3  ;;  %v625_v20 = vld [vmem:[%s952_s1 + $0x48] sm:$0xff]  ;;  %v145_v22 = vld [vmem:[%s951_s2 + $0xd0] sm:$0xff]  ;;  %v163_v23 = vld [vmem:[%s951_s2 + $0x160] sm:$0xff] }
   0x9   :  { %483 = vmatmul.msk.f32.vlgmr.msra.gmra.mxu0 %vm36_vm0, %v570_v6  ;;  %487 = vmatmul.msk.f32.vlgmr.msra.gmra.mxu1 %vm36_vm0, %v576_v7  ;;  %v128_v24 = vld [vmem:[%s951_s2 + $0x48] sm:$0xff]  ;;  %v162_v26 = vld [vmem:[%s951_s2 + $0x158] sm:$0xff]  ;;  %v127_v27 = vld [vmem:[%s951_s2 + $0x40] sm:$0xff] }
   0xa   :  { %229 = vmatpush.msrb.mxu0 %v166_v10  ;;  %202 = vmatpush.msra.mxu3 %v148_v12  ;;  %v144_v25 = vld [vmem:[%s951_s2 + $0xc8] sm:$0xff]  ;;  %v143_v28 = vld [vmem:[%s951_s2 + $0xc0] sm:$0xff]  ;;  %v161_v29 = vld [vmem:[%s951_s2 + $0x150] sm:$0xff] }
   0xb   :  { %174 = vmatpush.msra.mxu2 %v131_v14  ;;  %v126_v30 = vld [vmem:[%s951_s2 + $0x38] sm:$0xff]  ;;  %v667_v32 = vld [vmem:[%s952_s1 + $0x10] sm:$0xff]  ;;  %v160_v36 = vld [vmem:[%s951_s2 + $0x148] sm:$0xff] }
   0xc   :  { %230 = vmatpush.msrb.mxu0 %v165_v13  ;;  %203 = vmatpush.msra.mxu3 %v147_v15  ;;  %v142_v31 = vld [vmem:[%s951_s2 + $0xb8] sm:$0xff]  ;;  %v672_v33 = vld [vmem:[%s952_s1 + $0x50] sm:$0xff]  ;;  %v124_v37 = vld [vmem:[%s951_s2 + $0x28] sm:$0xff] }
   0xd   :  { %175 = vmatpush.msra.mxu2 %v130_v17  ;;  %v125_v34 = vld [vmem:[%s951_s2 + $0x30] sm:$0xff]  ;;  %v140_v38 = vld [vmem:[%s951_s2 + $0xa8] sm:$0xff]  ;;  %v159_v39 = vld [vmem:[%s951_s2 + $0x140] sm:$0xff] }
   0xe   :  { %231 = vmatpush.msrb.mxu0 %v164_v16  ;;  %204 = vmatpush.msra.mxu3 %v146_v18  ;;  %v141_v35 = vld [vmem:[%s951_s2 + $0xb0] sm:$0xff]  ;;  %v123_v40 = vld [vmem:[%s951_s2 + $0x20] sm:$0xff]  ;;  %v158_v42 = vld [vmem:[%s951_s2 + $0x138] sm:$0xff] }
   0xf   :  { %176 = vmatpush.msra.mxu2 %v129_v21  ;;  %v139_v41 = vld [vmem:[%s951_s2 + $0xa0] sm:$0xff]  ;;  %v122_v43 = vld [vmem:[%s951_s2 + $0x18] sm:$0xff]  ;;  %v121_v47 = vld [vmem:[%s951_s2 + $0x10] sm:$0xff] }
  0x10   :  { %205 = vmatpush.msra.mxu3 %v145_v22  ;;  %232 = vmatpush.msrb.mxu0 %v163_v23  ;;  %v138_v44 = vld [vmem:[%s951_s2 + $0x98] sm:$0xff]  ;;  %v137_v48 = vld [vmem:[%s951_s2 + $0x90] sm:$0xff]  ;;  %v120_v50 = vld [vmem:[%s951_s2 + $0x8] sm:$0xff] }
  0x11   :  { %484 = vmatmul.msk.f32.gmra.mxu0 %vm36_vm0, %v620_v19  ;;  %488 = vmatmul.msk.f32.gmra.mxu1 %vm36_vm0, %v625_v20  ;;  %v714_v45 = vld [vmem:[%s952_s1 + $0x18] sm:$0xff]  ;;  %v157_v49 = vld [vmem:[%s951_s2 + $0x130] sm:$0xff]  ;;  %v119_v51 = vld [vmem:[%s951_s2] sm:$0xff] }
  0x12   :  { %177 = vmatpush.msra.mxu2 %v128_v24  ;;  %206 = vmatpush.msra.mxu3 %v144_v25  ;;  %v719_v46 = vld [vmem:[%s952_s1 + $0x58] sm:$0xff]  ;;  %v136_v52 = vld [vmem:[%s951_s2 + $0x88] sm:$0xff]  ;;  %v135_v54 = vld [vmem:[%s951_s2 + $0x80] sm:$0xff] }
  0x13   :  { %233 = vmatpush.msrb.mxu0 %v162_v26  ;;  %v156_v53 = vld [vmem:[%s951_s2 + $0x128] sm:$0xff]  ;;  %v155_v55 = vld [vmem:[%s951_s2 + $0x120] sm:$0xff]  ;;  %v154_v56 = vld [vmem:[%s951_s2 + $0x118] sm:$0xff] }
  0x14   :  { %178 = vmatpush.msra.mxu2 %v127_v27  ;;  %207 = vmatpush.msra.mxu3 %v143_v28  ;;  %v153_v57 = vld [vmem:[%s951_s2 + $0x110] sm:$0xff]  ;;  %v152_v58 = vld [vmem:[%s951_s2 + $0x108] sm:$0xff]  ;;  %v151_v59 = vld [vmem:[%s951_s2 + $0x100] sm:$0xff] }
  0x15   :  { %234 = vmatpush.msrb.mxu0 %v161_v29  ;;  %v359_v60 = vld [vmem:[%s954_s4 + $0xf8] sm:$0xff]  ;;  %v358_v61 = vld [vmem:[%s954_s4 + $0xf0] sm:$0xff]  ;;  %v357_v62 = vld [vmem:[%s954_s4 + $0xe8] sm:$0xff] }
  0x16   :  { %179 = vmatpush.msra.mxu2 %v126_v30  ;;  %208 = vmatpush.msra.mxu3 %v142_v31  ;;  %v356_v63 = vld [vmem:[%s954_s4 + $0xe0] sm:$0xff]  ;;  %v355_v4 = vld [vmem:[%s954_s4 + $0xd8] sm:$0xff]  ;;  %v354_v9 = vld [vmem:[%s954_s4 + $0xd0] sm:$0xff] }
  0x17   :  { %235 = vmatpush.msrb.mxu0 %v160_v36  ;;  %v353_v10 = vld [vmem:[%s954_s4 + $0xc8] sm:$0xff]  ;;  %v352_v11 = vld [vmem:[%s954_s4 + $0xc0] sm:$0xff]  ;;  %v351_v12 = vld [vmem:[%s954_s4 + $0xb8] sm:$0xff] }
  0x18   :  { %180 = vmatpush.msra.mxu2 %v125_v34  ;;  %209 = vmatpush.msra.mxu3 %v141_v35  ;;  %v350_v15 = vld [vmem:[%s954_s4 + $0xb0] sm:$0xff]  ;;  %v349_v16 = vld [vmem:[%s954_s4 + $0xa8] sm:$0xff]  ;;  %v348_v23 = vld [vmem:[%s954_s4 + $0xa0] sm:$0xff] }
  0x19   :  { %485 = vmatmul.msk.f32.gmra.mxu0 %vm36_vm0, %v667_v32  ;;  %489 = vmatmul.msk.f32.gmra.mxu1 %vm36_vm0, %v672_v33  ;;  %v347_v24 = vld [vmem:[%s954_s4 + $0x98] sm:$0xff]  ;;  %v346_v25 = vld [vmem:[%s954_s4 + $0x90] sm:$0xff]  ;;  %v345_v26 = vld [vmem:[%s954_s4 + $0x88] sm:$0xff] }
  0x1a   :  { %181 = vmatpush.msra.mxu2 %v124_v37  ;;  %210 = vmatpush.msra.mxu3 %v140_v38  ;;  %v344_v27 = vld [vmem:[%s954_s4 + $0x80] sm:$0xff] }
  0x1b   :  { %236 = vmatpush.msrb.mxu0 %v159_v39  ;;  %v499_v30 = vld [vmem:[%s953_s3] ss:$0 sm:$0xff] }
  0x1c   :  { %182 = vmatpush.msra.mxu2 %v123_v40  ;;  %211 = vmatpush.msra.mxu3 %v139_v41 }
  0x1d   :  { %237 = vmatpush.msrb.mxu0 %v158_v42 }
  0x1e   :  { %183 = vmatpush.msra.mxu2 %v122_v43  ;;  %212 = vmatpush.msra.mxu3 %v138_v44 }
  0x1f   :  { %238 = vmatpush.msrb.mxu0 %v157_v49 }
  0x20   :  { %184 = vmatpush.msra.mxu2 %v121_v47  ;;  %213 = vmatpush.msra.mxu3 %v137_v48 }
  0x21   :  { %486 = vmatmul.msk.f32.gmra.mxu0 %vm36_vm0, %v714_v45  ;;  %490 = vmatmul.msk.f32.gmra.mxu1 %vm36_vm0, %v719_v46 }
  0x22   :  { %185 = vmatpush.msra.mxu2 %v120_v50  ;;  %214 = vmatpush.msra.mxu3 %v136_v52 }
  0x23   :  { %239 = vmatpush.msrb.mxu0 %v156_v53 }
  0x24   :  { %186 = vmatpush.msra.mxu2 %v119_v51  ;;  %215 = vmatpush.msra.mxu3 %v135_v54 }
  0x25   :  { %240 = vmatpush.msrb.mxu0 %v155_v55  ;;  %216 = vmatmul.f32.vlgmr.msra.gmra.mxu3 %v558_v3 }
  0x27   :  { %241 = vmatpush.msrb.mxu0 %v154_v56 }
  0x29   :  { %242 = vmatpush.msrb.mxu0 %v153_v57 }
  0x2b   :  { %243 = vmatpush.msrb.mxu0 %v152_v58 }
  0x2d   :  { %244 = vmatpush.msrb.mxu0 %v151_v59  ;;  %219 = vmatmul.f32.gmra.mxu3 %v551_v2 }
  0x2f   :  { %409 = vmatpush.msra.mxu0 %v359_v60 }
  0x31   :  { %410 = vmatpush.msra.mxu0 %v358_v61 }
  0x33   :  { %411 = vmatpush.msra.mxu0 %v357_v62 }
  0x35   :  { %222 = vmatmul.f32.gmra.mxu3 %v544_v1  ;;  %412 = vmatpush.msra.mxu0 %v356_v63 }
  0x37   :  { %413 = vmatpush.msra.mxu0 %v355_v4 }
  0x39   :  { %414 = vmatpush.msra.mxu0 %v354_v9  ;;  %v336_v9 = vld [vmem:[%s954_s4 + $0x40] sm:$0xff] }
  0x3b   :  { %415 = vmatpush.msra.mxu0 %v353_v10  ;;  %v335_v10 = vld [vmem:[%s954_s4 + $0x38] sm:$0xff] }
  0x3d   :  { %225 = vmatmul.f32.gmra.mxu3 %v539_v0  ;;  %416 = vmatpush.msra.mxu0 %v352_v11  ;;  %v372_v11 = vld [vmem:[%s954_s4 + $0x160] sm:$0xff] }
  0x3f   :  { %417 = vmatpush.msra.mxu0 %v351_v12  ;;  %v334_v12 = vld [vmem:[%s954_s4 + $0x30] sm:$0xff] }
  0x41   :  { %418 = vmatpush.msra.mxu0 %v350_v15  ;;  %v370_v15 = vld [vmem:[%s954_s4 + $0x150] sm:$0xff] }
  0x43   :  { %419 = vmatpush.msra.mxu0 %v349_v16  ;;  %v332_v16 = vld [vmem:[%s954_s4 + $0x20] sm:$0xff] }
  0x45   :  { %420 = vmatpush.msra.mxu0 %v348_v23  ;;  %v367_v23 = vld [vmem:[%s954_s4 + $0x138] sm:$0xff] }
  0x47   :  { %421 = vmatpush.msra.mxu0 %v347_v24  ;;  %v329_v24 = vld [vmem:[%s954_s4 + $0x8] sm:$0xff] }
  0x49   :  { %422 = vmatpush.msra.mxu0 %v346_v25  ;;  %v366_v25 = vld [vmem:[%s954_s4 + $0x130] sm:$0xff] }
  0x4b   :  { %423 = vmatpush.msra.mxu0 %v345_v26  ;;  %v328_v26 = vld [vmem:[%s954_s4] sm:$0xff] }
  0x4d   :  { %424 = vmatpush.msra.mxu0 %v344_v27  ;;  %v365_v27 = vld [vmem:[%s954_s4 + $0x128] sm:$0xff] }
  0x86   :  { %v66_v5 = vpop.f32.mrf.mxu0  ;;  %v107_v8 = vpop.f32.mrf.mxu1 }
  0x87   :  { %187 = vmatmul.f32.vlgmr.msra.gmra.mxu2 %v66_v5  ;;  %245 = vmatmul.f32.vlgmr.msrb.gmra.mxu0 %v107_v8  ;;  %v337_v5 = vld [vmem:[%s954_s4 + $0x48] sm:$0xff] }
  0x88   :  { %v373_v8 = vld [vmem:[%s954_s4 + $0x168] sm:$0xff] }
  0x8e   :  { %v69_v13 = vpop.f32.mrf.mxu0  ;;  %v110_v14 = vpop.f32.mrf.mxu1 }
  0x8f   :  { %190 = vmatmul.f32.gmra.mxu2 %v69_v13  ;;  %248 = vmatmul.f32.gmra.mxu0 %v110_v14  ;;  %v371_v13 = vld [vmem:[%s954_s4 + $0x158] sm:$0xff]  ;;  %v333_v14 = vld [vmem:[%s954_s4 + $0x28] sm:$0xff] }
  0x96   :  { %v72_v17 = vpop.f32.mrf.mxu0  ;;  %v113_v18 = vpop.f32.mrf.mxu1 }
  0x97   :  { %193 = vmatmul.f32.gmra.mxu2 %v72_v17  ;;  %251 = vmatmul.f32.gmra.mxu0 %v113_v18  ;;  %v369_v17 = vld [vmem:[%s954_s4 + $0x148] sm:$0xff]  ;;  %v331_v18 = vld [vmem:[%s954_s4 + $0x18] sm:$0xff] }
  0x9e   :  { %v75_v21 = vpop.f32.mrf.mxu0  ;;  %v116_v22 = vpop.f32.mrf.mxu1 }
  0x9f   :  { %196 = vmatmul.f32.gmra.mxu2 %v75_v21  ;;  %254 = vmatmul.f32.gmra.mxu0 %v116_v22  ;;  %v368_v21 = vld [vmem:[%s954_s4 + $0x140] sm:$0xff]  ;;  %v330_v22 = vld [vmem:[%s954_s4 + $0x10] sm:$0xff] }
  0xa8   :  { %v217_v28 = vpop.f32.mrf.mxu3 }
  0xb0   :  { %v220_v36 = vpop.f32.mrf.mxu3 }
  0xb8   :  { %v223_v47 = vpop.f32.mrf.mxu3 }
  0xc0   :  { %v226_v57 = vpop.f32.mrf.mxu3 }
 0x104   :  { %v246_v29 = vpop.f32.mrf.mxu0 }
 0x10a   :  { %v188_v31 = vpop.f32.mrf.mxu2 }
 0x10b   :  { %v189_v34 = vadd.f32 %v499_v30, %v188_v31  ;;  %v361_v31 = vld [vmem:[%s954_s4 + $0x108] sm:$0xff] }
 0x10c   :  { %v249_v38 = vpop.f32.mrf.mxu0 }
 0x10d   :  { %v218_v35 = vadd.f32 %v217_v28, %v189_v34  ;;  %v364_v28 = vld [vmem:[%s954_s4 + $0x120] sm:$0xff] }
 0x10e   :  { %v360_v34 = vld [vmem:[%s954_s4 + $0x100] sm:$0xff] }
 0x10f   :  { %v247_v37 = vadd.f32 %v246_v29, %v218_v35  ;;  %v363_v29 = vld [vmem:[%s954_s4 + $0x118] sm:$0xff] }
 0x111   :  { %vm258_vm1 = vcmp.gt.f32.partialorder %v247_v37, 0.0  ;;  %v262_v39 = vmul.f32 0.2, %v247_v37 }
 0x112   :  { %v191_v40 = vpop.f32.mrf.mxu2 }
 0x113   :  { %v192_v41 = vadd.f32 %v499_v30, %v191_v40  ;;  %v266_v42 = vsel %vm258_vm1, %v247_v37, %v262_v39 }
 0x114   :  { %425 = vmatmul.f32.vlgmr.msra.gmra.mxu0 %v266_v42  ;;  %v252_v50 = vpop.f32.mrf.mxu0 }
 0x115   :  { %v221_v43 = vadd.f32 %v220_v36, %v192_v41 }
 0x117   :  { %v250_v44 = vadd.f32 %v249_v38, %v221_v43 }
 0x119   :  { %v263_v48 = vmul.f32 0.2, %v250_v44  ;;  %vm259_vm2 = vcmp.gt.f32.partialorder %v250_v44, 0.0 }
 0x11a   :  { %v194_v49 = vpop.f32.mrf.mxu2 }
 0x11b   :  { %v195_v51 = vadd.f32 %v499_v30, %v194_v49  ;;  %v267_v52 = vsel %vm259_vm2, %v250_v44, %v263_v48  ;;  %v500_v44 = vld [vmem:[%s955_s5] ss:$0 sm:$0xff] }
 0x11c   :  { %428 = vmatmul.f32.gmra.mxu0 %v267_v52  ;;  %v255_v60 = vpop.f32.mrf.mxu0 }
 0x11d   :  { %v224_v53 = vadd.f32 %v223_v47, %v195_v51 }
 0x11f   :  { %v253_v54 = vadd.f32 %v252_v50, %v224_v53 }
 0x121   :  { %v264_v55 = vmul.f32 0.2, %v253_v54  ;;  %vm260_vm3 = vcmp.gt.f32.partialorder %v253_v54, 0.0 }
 0x122   :  { %v197_v56 = vpop.f32.mrf.mxu2 }
 0x123   :  { %v198_v58 = vadd.f32 %v499_v30, %v197_v56  ;;  %v268_v59 = vsel %vm260_vm3, %v253_v54, %v264_v55  ;;  %v362_v30 = vld [vmem:[%s954_s4 + $0x110] sm:$0xff] }
 0x124   :  { %431 = vmatmul.f32.gmra.mxu0 %v268_v59 }
 0x125   :  { %v227_v61 = vadd.f32 %v226_v57, %v198_v58 }
 0x127   :  { %v256_v62 = vadd.f32 %v255_v60, %v227_v61 }
 0x129   :  { %v265_v63 = vmul.f32 0.2, %v256_v62  ;;  %vm261_vm4 = vcmp.gt.f32.partialorder %v256_v62, 0.0 }
 0x12b   :  { %v269_v4 = vsel %vm261_vm4, %v256_v62, %v265_v63 }
 0x12c   :  { %282 = vmatpush.msrb.mxu1 %v269_v4  ;;  %311 = vmatpush.msrb.mxu2 %v269_v4 }
 0x12d   :  { %434 = vmatmul.f32.gmra.mxu0 %v269_v4 }
 0x12e   :  { %283 = vmatpush.msrb.mxu1 %v268_v59  ;;  %312 = vmatpush.msrb.mxu2 %v268_v59 }
 0x130   :  { %284 = vmatpush.msrb.mxu1 %v267_v52  ;;  %313 = vmatpush.msrb.mxu2 %v267_v52 }
 0x132   :  { %285 = vmatpush.msrb.mxu1 %v266_v42  ;;  %314 = vmatpush.msrb.mxu2 %v266_v42 }
 0x133   :  { %491 = vmatmul.msk.f32.vlgmr.msrb.gmra.mxu1 %vm36_vm0, %v570_v6  ;;  %495 = vmatmul.msk.f32.vlgmr.msrb.gmra.mxu2 %vm36_vm0, %v576_v7  ;;  %v343_v6 = vld [vmem:[%s954_s4 + $0x78] sm:$0xff]  ;;  %v342_v7 = vld [vmem:[%s954_s4 + $0x70] sm:$0xff] }
 0x134   :  { %380 = vmatpush.msrb.mxu3 %v343_v6 }
 0x136   :  { %381 = vmatpush.msrb.mxu3 %v342_v7 }
 0x13b   :  { %492 = vmatmul.msk.f32.gmra.mxu1 %vm36_vm0, %v620_v19  ;;  %496 = vmatmul.msk.f32.gmra.mxu2 %vm36_vm0, %v625_v20  ;;  %v341_v19 = vld [vmem:[%s954_s4 + $0x68] sm:$0xff]  ;;  %v340_v20 = vld [vmem:[%s954_s4 + $0x60] sm:$0xff] }
 0x13c   :  { %382 = vmatpush.msrb.mxu3 %v341_v19 }
 0x13e   :  { %383 = vmatpush.msrb.mxu3 %v340_v20 }
 0x143   :  { %493 = vmatmul.msk.f32.gmra.mxu1 %vm36_vm0, %v667_v32  ;;  %497 = vmatmul.msk.f32.gmra.mxu2 %vm36_vm0, %v672_v33  ;;  %v339_v32 = vld [vmem:[%s954_s4 + $0x58] sm:$0xff]  ;;  %v338_v33 = vld [vmem:[%s954_s4 + $0x50] sm:$0xff] }
 0x144   :  { %384 = vmatpush.msrb.mxu3 %v339_v32 }
 0x146   :  { %385 = vmatpush.msrb.mxu3 %v338_v33 }
 0x148   :  { %386 = vmatpush.msrb.mxu3 %v337_v5 }
 0x14a   :  { %387 = vmatpush.msrb.mxu3 %v336_v9 }
 0x14b   :  { %494 = vmatmul.msk.f32.gmra.mxu1 %vm36_vm0, %v714_v45  ;;  %498 = vmatmul.msk.f32.gmra.mxu2 %vm36_vm0, %v719_v46  ;;  %v375_v45 = vld [vmem:[%s954_s4 + $0x178] sm:$0xff]  ;;  %v374_v46 = vld [vmem:[%s954_s4 + $0x170] sm:$0xff] }
 0x14c   :  { %438 = vmatpush.msra.mxu1 %v375_v45  ;;  %388 = vmatpush.msrb.mxu3 %v335_v10 }
 0x14e   :  { %439 = vmatpush.msra.mxu1 %v374_v46  ;;  %389 = vmatpush.msrb.mxu3 %v334_v12 }
 0x150   :  { %440 = vmatpush.msra.mxu1 %v373_v8  ;;  %390 = vmatpush.msrb.mxu3 %v333_v14 }
 0x152   :  { %441 = vmatpush.msra.mxu1 %v372_v11  ;;  %391 = vmatpush.msrb.mxu3 %v332_v16 }
 0x154   :  { %442 = vmatpush.msra.mxu1 %v371_v13  ;;  %392 = vmatpush.msrb.mxu3 %v331_v18 }
 0x156   :  { %443 = vmatpush.msra.mxu1 %v370_v15  ;;  %393 = vmatpush.msrb.mxu3 %v330_v22 }
 0x158   :  { %444 = vmatpush.msra.mxu1 %v369_v17  ;;  %394 = vmatpush.msrb.mxu3 %v329_v24 }
 0x15a   :  { %445 = vmatpush.msra.mxu1 %v368_v21  ;;  %395 = vmatpush.msrb.mxu3 %v328_v26 }
 0x15c   :  { %446 = vmatpush.msra.mxu1 %v367_v23 }
 0x15e   :  { %447 = vmatpush.msra.mxu1 %v366_v25 }
 0x160   :  { %448 = vmatpush.msra.mxu1 %v365_v27 }
 0x162   :  { %449 = vmatpush.msra.mxu1 %v364_v28 }
 0x164   :  { %450 = vmatpush.msra.mxu1 %v363_v29 }
 0x166   :  { %451 = vmatpush.msra.mxu1 %v362_v30 }
 0x168   :  { %452 = vmatpush.msra.mxu1 %v361_v31 }
 0x16a   :  { %453 = vmatpush.msra.mxu1 %v360_v34 }
 0x191   :  { %v426_v43 = vpop.f32.mrf.mxu0 }
 0x199   :  { %v429_v51 = vpop.f32.mrf.mxu0 }
 0x1a1   :  { %v432_v59 = vpop.f32.mrf.mxu0 }
 0x1aa   :  { %v435_v20 = vpop.f32.mrf.mxu0 }
 0x1b0   :  { %v287_v35 = vpop.f32.mrf.mxu1 }
 0x1b1   :  { %396 = vmatmul.f32.vlgmr.msrb.gmra.mxu3 %v287_v35 }
 0x1b6   :  { %v316_v36 = vpop.f32.mrf.mxu2 }
 0x1b7   :  { %454 = vmatmul.f32.vlgmr.msra.gmra.mxu1 %v316_v36 }
 0x1b8   :  { %v290_v37 = vpop.f32.mrf.mxu1 }
 0x1b9   :  { %399 = vmatmul.f32.gmra.mxu3 %v290_v37 }
 0x1be   :  { %v319_v38 = vpop.f32.mrf.mxu2 }
 0x1bf   :  { %457 = vmatmul.f32.gmra.mxu1 %v319_v38 }
 0x1c0   :  { %v293_v39 = vpop.f32.mrf.mxu1 }
 0x1c1   :  { %402 = vmatmul.f32.gmra.mxu3 %v293_v39 }
 0x1c6   :  { %v322_v40 = vpop.f32.mrf.mxu2 }
 0x1c7   :  { %460 = vmatmul.f32.gmra.mxu1 %v322_v40 }
 0x1c8   :  { %v296_v41 = vpop.f32.mrf.mxu1 }
 0x1c9   :  { %405 = vmatmul.f32.gmra.mxu3 %v296_v41 }
 0x1ce   :  { %v325_v42 = vpop.f32.mrf.mxu2 }
 0x1cf   :  { %463 = vmatmul.f32.gmra.mxu1 %v325_v42 }
 0x234   :  { %v397_v47 = vpop.f32.mrf.mxu3  ;;  %v455_v48 = vpop.f32.mrf.mxu1 }
 0x235   :  { %v398_v49 = vadd.f32 %v500_v44, %v397_v47 }
 0x237   :  { %v427_v50 = vadd.f32 %v426_v43, %v398_v49 }
 0x239   :  { %v456_v52 = vadd.f32 %v455_v48, %v427_v50 }
 0x23b   :  { %v467_v53 = vadd.f32 %v456_v52, %v558_v3 }
 0x23c   :  { %v400_v54 = vpop.f32.mrf.mxu3  ;;  %v458_v55 = vpop.f32.mrf.mxu1 }
 0x23d   :  { %471 = vst [vmem:[%s956_s6] sm:$0xff] %v467_v53  ;;  %v401_v56 = vadd.f32 %v500_v44, %v400_v54 }
 0x23f   :  { %v430_v57 = vadd.f32 %v429_v51, %v401_v56 }
 0x241   :  { %v459_v58 = vadd.f32 %v458_v55, %v430_v57 }
 0x243   :  { %v468_v60 = vadd.f32 %v459_v58, %v551_v2 }
 0x244   :  { %v403_v61 = vpop.f32.mrf.mxu3  ;;  %v461_v62 = vpop.f32.mrf.mxu1 }
 0x245   :  { %472 = vst [vmem:[%s956_s6 + $0x8] sm:$0xff] %v468_v60  ;;  %v404_v63 = vadd.f32 %v500_v44, %v403_v61 }
 0x247   :  { %v433_v3 = vadd.f32 %v432_v59, %v404_v63 }
 0x249   :  { %v462_v4 = vadd.f32 %v461_v62, %v433_v3 }
 0x24b   :  { %v469_v6 = vadd.f32 %v462_v4, %v544_v1 }
 0x24c   :  { %v406_v7 = vpop.f32.mrf.mxu3  ;;  %v464_v32 = vpop.f32.mrf.mxu1 }
 0x24d   :  { %473 = vst [vmem:[%s956_s6 + $0x10] sm:$0xff] %v469_v6  ;;  %v407_v19 = vadd.f32 %v500_v44, %v406_v7 }
 0x24f   :  { %v436_v2 = vadd.f32 %v435_v20, %v407_v19 }
 0x251   :  { %v465_v33 = vadd.f32 %v464_v32, %v436_v2 }
 0x253   :  { %v470_v45 = vadd.f32 %v465_v33, %v539_v0 }
 0x255   :  { %474 = vst [vmem:[%s956_s6 + $0x18] sm:$0xff] %v470_v45 }

</bundles_post_ra>
